<compile_context>
chip_gen: v5e
topology: v5e:2x2
jax: 0.10.0
libtpu: 0.0.40
codegen_flags: <defaults>
</compile_context>

<pallas_src>
import functools
import math

import numpy as np
import jax
import jax.numpy as jnp
from jax.experimental import pallas as pl
from jax.experimental.pallas import tpu as pltpu


def _round_up(x, m):
    return ((x + m - 1) // m) * m


def _gcn_kernel(alpha_ref, adj_ref, x_ref, h0_ref, w_ref, *rest, residual):
    """Grid = (adj row blocks [parallel], node contraction blocks [arbitrary])."""
    if residual:
        xr_ref, out_ref, acc_ref = rest
    else:
        out_ref, acc_ref = rest

    k = pl.program_id(1)

    @pl.when(k == 0)
    def _init():
        acc_ref[...] = jnp.zeros_like(acc_ref)

    # hi-block accumulation: adj(TM, TK) @ x(TK, Fp) on the MXU, f32 accumulate.
    acc_ref[...] += jnp.dot(
        adj_ref[...], x_ref[...], preferred_element_type=jnp.float32
    )

    @pl.when(k == pl.num_programs(1) - 1)
    def _finalize():
        alpha = alpha_ref[0]
        # support = (1 - alpha) * hi + alpha * h0   (f32 elementwise mix)
        support = (1.0 - alpha) * acc_ref[...] + alpha * h0_ref[...].astype(
            jnp.float32
        )
        # out = support @ W'   where W' = theta*W + (1-theta)*I (folded at init)
        out = jnp.dot(
            support.astype(w_ref.dtype),
            w_ref[...],
            preferred_element_type=jnp.float32,
        )
        if residual:
            out = out + xr_ref[...].astype(jnp.float32)
        out_ref[...] = out.astype(out_ref.dtype)


def fold_gcn_weight(weight, *, lamda, l, lane=128):
    """Init-time fold: W' = theta*W + (1-theta)*I, zero-padded to (Fp, Fp).

    Call once per layer (at parameter-init time), not per forward call.
    """
    fin, fout = weight.shape
    assert fin == fout, "variant=False GCNII layer requires in_features == out_features"
    theta = math.log(lamda / l + 1.0)
    w_folded = theta * weight.astype(jnp.float32) + (1.0 - theta) * jnp.eye(
        fin, dtype=jnp.float32
    )
    fp = _round_up(fout, lane)
    return jnp.pad(w_folded, ((0, fp - fin), (0, fp - fout)))


def _nbytes(shape, dt):
    sz = 1
    for s in shape:
        sz *= s
    return sz * np.dtype(dt).itemsize


def graph_convolution(
    x,
    adj,
    h0,
    w_folded,
    *,
    alpha,
    residual=False,
    tm=256,
    tk=512,
    mxu_dtype=None,
):
    """Pallas forward of GraphConvolution (variant=False path).

    `w_folded` must come from `fold_gcn_weight` (theta already folded in).
    `mxu_dtype` (e.g. jnp.bfloat16) only affects the matmul operands; all
    elementwise mixing is done in float32.
    """
    n, f = x.shape
    assert adj.shape == (n, n)
    assert h0.shape == (n, f)
    fp = w_folded.shape[0]
    assert w_folded.shape == (fp, fp) and fp == _round_up(f, 128)

    out_dtype = x.dtype
    mxu_dtype = np.dtype(x.dtype if mxu_dtype is None else mxu_dtype)

    # ---- tile sizes: lane/sublane aligned, clamped for small graphs ----------
    n_128 = _round_up(n, 128)
    tm = min(tm, n_128)
    tk = min(tk, n_128)
    assert tm % 128 == 0 and tk % 128 == 0

    # ---- independent row / contraction padding (less waste than lcm granule) -
    n_rows_p = _round_up(n, tm)
    n_cols_p = _round_up(n, tk)

    adj_p = jnp.pad(adj, ((0, n_rows_p - n), (0, n_cols_p - n))).astype(mxu_dtype)
    x_mxu = jnp.pad(x, ((0, n_cols_p - n), (0, fp - f))).astype(mxu_dtype)
    h0_p = jnp.pad(h0, ((0, n_rows_p - n), (0, fp - f)))  # stays in its (f32) dtype
    w_p = w_folded.astype(mxu_dtype)

    alpha_arr = jnp.array([alpha], dtype=jnp.float32)

    grid = (n_rows_p // tm, n_cols_p // tk)

    # index_maps receive the scalar-prefetch ref as a trailing positional arg.
    in_specs = [
        pl.BlockSpec((tm, tk), lambda i, k, a: (i, k)),   # adj row x col tile
        pl.BlockSpec((tk, fp), lambda i, k, a: (k, 0)),   # x contraction tile
        pl.BlockSpec((tm, fp), lambda i, k, a: (i, 0)),   # h0 row tile (resident over k)
        pl.BlockSpec((fp, fp), lambda i, k, a: (0, 0)),   # folded weight (resident)
    ]
    args = [alpha_arr, adj_p, x_mxu, h0_p, w_p]
    if residual:
        x_res = jnp.pad(x, ((0, n_rows_p - n), (0, fp - f)))  # residual add kept in f32
        in_specs.append(pl.BlockSpec((tm, fp), lambda i, k, a: (i, 0)))
        args.append(x_res)

    # VMEM budget: double-buffered inputs/output + f32 accumulator, with headroom.
    vmem_bytes = (
        2 * _nbytes((tm, tk), mxu_dtype)        # adj
        + 2 * _nbytes((tk, fp), mxu_dtype)      # x
        + 2 * _nbytes((tm, fp), h0_p.dtype)     # h0
        + 2 * _nbytes((fp, fp), mxu_dtype)      # weight
        + 2 * _nbytes((tm, fp), out_dtype)      # out
        + _nbytes((tm, fp), jnp.float32)        # accumulator scratch
    )
    if residual:
        vmem_bytes += 2 * _nbytes((tm, fp), x.dtype)
    # Cap below v7x's 64 MiB physical VMEM; never below ~24 MiB.
    vmem_limit = int(min(48 * 1024 * 1024, max(2 * vmem_bytes, 24 * 1024 * 1024)))

    flops = 2 * n_rows_p * n_cols_p * fp + 2 * n_rows_p * fp * fp
    bytes_accessed = (
        _nbytes((n_rows_p, n_cols_p), mxu_dtype)
        + _nbytes((n_cols_p, fp), mxu_dtype)
        + _nbytes((n_rows_p, fp), h0_p.dtype)
        + _nbytes((fp, fp), mxu_dtype)
        + _nbytes((n_rows_p, fp), out_dtype)
    )

    kernel = functools.partial(_gcn_kernel, residual=residual)

    out_p = pl.pallas_call(
        kernel,
        out_shape=jax.ShapeDtypeStruct((n_rows_p, fp), out_dtype),
        grid_spec=pltpu.PrefetchScalarGridSpec(
            num_scalar_prefetch=1,                       # alpha -> SMEM
            grid=grid,
            in_specs=in_specs,
            out_specs=pl.BlockSpec((tm, fp), lambda i, k, a: (i, 0)),
            scratch_shapes=[pltpu.VMEM((tm, fp), jnp.float32)],
        ),
        compiler_params=pltpu.CompilerParams(
            dimension_semantics=("parallel", "arbitrary"),
            vmem_limit_bytes=vmem_limit,
        ),
        cost_estimate=pl.CostEstimate(
            flops=flops, transcendentals=0, bytes_accessed=bytes_accessed
        ),
    )(*args)

    return out_p[:n, :f]


def graph_convolution_ref(x, adj, h0, weight, *, lamda, alpha, l, residual=False):
    """Pure-JAX reference matching the PyTorch module (variant=False)."""
    theta = math.log(lamda / l + 1.0)
    hi = adj @ x
    support = (1.0 - alpha) * hi + alpha * h0
    out = theta * (support @ weight) + (1.0 - theta) * support
    if residual:
        out = out + x
    return out


if __name__ == "__main__":
    # Small shapes consistent with the module: N nodes, hidden in==out features.
    N, F = 256, 64
    LAMDA, ALPHA, L = 0.5, 0.1, 1

    key = jax.random.PRNGKey(0)
    k_adj, k_x, k_h0, k_w = jax.random.split(key, 4)

    # Symmetric, row-normalized-ish adjacency (dense stand-in for the sparse adj).
    a = jax.random.uniform(k_adj, (N, N), dtype=jnp.float32)
    adj = (a + a.T) / (2.0 * N)

    x = jax.random.normal(k_x, (N, F), dtype=jnp.float32)
    h0 = jax.random.normal(k_h0, (N, F), dtype=jnp.float32)

    # reset_parameters(): weight ~ U(-stdv, stdv), stdv = 1/sqrt(out_features)
    stdv = 1.0 / math.sqrt(F)
    weight = jax.random.uniform(
        k_w, (F, F), dtype=jnp.float32, minval=-stdv, maxval=stdv
    )

    # Init-time fold of theta into the weight (done once per layer).
    w_folded = fold_gcn_weight(weight, lamda=LAMDA, l=L)

    ref = graph_convolution_ref(x, adj, h0, weight, lamda=LAMDA, alpha=ALPHA, l=L)

    # --- f32 path (small tiles so the 2x2 grid + accumulator path is exercised) ---
    out = graph_convolution(
        x, adj, h0, w_folded, alpha=ALPHA, residual=False, tm=128, tk=128
    )
    out = jax.block_until_ready(out)
    assert out.shape == (N, F)
    assert jnp.allclose(out, ref, atol=5e-3, rtol=5e-3), "f32 mismatch vs reference"

    # --- f32 path with default (large) tiles: single-block grid, ragged N padding ---
    out_big = graph_convolution(x, adj, h0, w_folded, alpha=ALPHA, residual=False)
    out_big = jax.block_until_ready(out_big)
    assert jnp.allclose(out_big, ref, atol=5e-3, rtol=5e-3), "default-tile mismatch"

    # --- residual path ---
    ref_res = graph_convolution_ref(
        x, adj, h0, weight, lamda=LAMDA, alpha=ALPHA, l=L, residual=True
    )
    out_res = graph_convolution(
        x, adj, h0, w_folded, alpha=ALPHA, residual=True, tm=128, tk=128
    )
    out_res = jax.block_until_ready(out_res)
    assert jnp.allclose(out_res, ref_res, atol=5e-3, rtol=5e-3), "residual mismatch"

    # --- bf16 MXU fast path (v6e/v7x); elementwise mix stays f32 ---
    out_bf16 = graph_convolution(
        x, adj, h0, w_folded, alpha=ALPHA, residual=False,
        tm=128, tk=128, mxu_dtype=jnp.bfloat16,
    )
    out_bf16 = jax.block_until_ready(out_bf16)
    assert float(jnp.max(jnp.abs(out_bf16 - ref))) < 5e-2, "bf16 path diverged"

    print("KERNEL_OK")
</pallas_src>

<mosaic_0001>
module attributes {stable_mosaic.version = 11 : i64} {
  func.func @_gcn_kernel(%arg0: i32, %arg1: i32, %arg2: memref<1xf32, #tpu.memory_space<smem>>, %arg3: memref<128x128xf32, #tpu.memory_space<vmem>>, %arg4: memref<128x128xf32, #tpu.memory_space<vmem>>, %arg5: memref<128x128xf32, #tpu.memory_space<vmem>>, %arg6: memref<128x128xf32, #tpu.memory_space<vmem>>, %arg7: memref<128x128xf32, #tpu.memory_space<vmem>>, %arg8: memref<128x128xf32, #tpu.memory_space<vmem>>) attributes {dimension_semantics = [#tpu.dimension_semantics<parallel>, #tpu.dimension_semantics<arbitrary>], iteration_bounds = array<i64: 2, 2>, scalar_prefetch = 1 : i64, scratch_operands = 1 : i64, tpu.core_type = #tpu.core_type<tc>, window_params = [{transform_indices = @transform_0, window_bounds = array<i64: 128, 128>}, {transform_indices = @transform_1, window_bounds = array<i64: 128, 128>}, {transform_indices = @transform_2, window_bounds = array<i64: 128, 128>}, {pipeline_mode = #tpu.pipeline_mode<synchronous>, transform_indices = @transform_3, window_bounds = array<i64: 128, 128>}, {transform_indices = @transform_4, window_bounds = array<i64: 128, 128>}]} {
    %c0_i32 = arith.constant 0 : i32
    %0 = arith.cmpi eq, %arg1, %c0_i32 : i32
    %1 = arith.extui %0 : i1 to i32
    %c0_i32_0 = arith.constant 0 : i32
    %2 = arith.cmpi ne, %1, %c0_i32_0 : i32
    scf.if %2 {
      %cst_9 = arith.constant 0.000000e+00 : f32
      %12 = vector.broadcast %cst_9 : f32 to vector<128x128xf32>
      %c0_10 = arith.constant 0 : index
      %c0_11 = arith.constant 0 : index
      %13 = vector.load %arg8[%c0_10, %c0_11] : memref<128x128xf32, #tpu.memory_space<vmem>>, vector<128x128xf32>
      tpu.vector_store %arg8[%c0_10, %c0_11], %12 {strides = array<i32>} : memref<128x128xf32, #tpu.memory_space<vmem>>, vector<128x128xf32>,
    } else {
    }
    %c0 = arith.constant 0 : index
    %c0_1 = arith.constant 0 : index
    %3 = vector.load %arg8[%c0, %c0_1] : memref<128x128xf32, #tpu.memory_space<vmem>>, vector<128x128xf32>
    %c0_2 = arith.constant 0 : index
    %c0_3 = arith.constant 0 : index
    %4 = vector.load %arg3[%c0_2, %c0_3] : memref<128x128xf32, #tpu.memory_space<vmem>>, vector<128x128xf32>
    %c0_4 = arith.constant 0 : index
    %c0_5 = arith.constant 0 : index
    %5 = vector.load %arg4[%c0_4, %c0_5] : memref<128x128xf32, #tpu.memory_space<vmem>>, vector<128x128xf32>
    %cst = arith.constant dense<0.000000e+00> : vector<128x128xf32>
    %6 = tpu.matmul %4, %5, %cst {dimension_numbers = #tpu.dot_dimension_numbers<[1], [0], [0], [1], [0, 0, 1, 1], [], []>} : vector<128x128xf32>, vector<128x128xf32>, vector<128x128xf32> -> vector<128x128xf32>
    %7 = arith.addf %3, %6 : vector<128x128xf32>
    %c0_6 = arith.constant 0 : index
    %c0_7 = arith.constant 0 : index
    %8 = vector.load %arg8[%c0_6, %c0_7] : memref<128x128xf32, #tpu.memory_space<vmem>>, vector<128x128xf32>
    tpu.vector_store %arg8[%c0_6, %c0_7], %7 {strides = array<i32>} : memref<128x128xf32, #tpu.memory_space<vmem>>, vector<128x128xf32>,
    %c1_i32 = arith.constant 1 : i32
    %9 = arith.cmpi eq, %arg1, %c1_i32 : i32
    %10 = arith.extui %9 : i1 to i32
    %c0_i32_8 = arith.constant 0 : i32
    %11 = arith.cmpi ne, %10, %c0_i32_8 : i32
    scf.if %11 {
      %c0_9 = arith.constant 0 : index
      %12 = memref.load %arg2[%c0_9] : memref<1xf32, #tpu.memory_space<smem>>
      %cst_10 = arith.constant 1.000000e+00 : f32
      %13 = arith.subf %cst_10, %12 : f32
      %c0_11 = arith.constant 0 : index
      %c0_12 = arith.constant 0 : index
      %14 = vector.load %arg8[%c0_11, %c0_12] : memref<128x128xf32, #tpu.memory_space<vmem>>, vector<128x128xf32>
      %15 = vector.broadcast %13 : f32 to vector<128x128xf32>
      %16 = arith.mulf %15, %14 : vector<128x128xf32>
      %c0_13 = arith.constant 0 : index
      %c0_14 = arith.constant 0 : index
      %17 = vector.load %arg5[%c0_13, %c0_14] : memref<128x128xf32, #tpu.memory_space<vmem>>, vector<128x128xf32>
      %18 = vector.broadcast %12 : f32 to vector<128x128xf32>
      %19 = arith.mulf %18, %17 : vector<128x128xf32>
      %20 = arith.addf %16, %19 : vector<128x128xf32>
      %c0_15 = arith.constant 0 : index
      %c0_16 = arith.constant 0 : index
      %21 = vector.load %arg6[%c0_15, %c0_16] : memref<128x128xf32, #tpu.memory_space<vmem>>, vector<128x128xf32>
      %cst_17 = arith.constant dense<0.000000e+00> : vector<128x128xf32>
      %22 = tpu.matmul %20, %21, %cst_17 {dimension_numbers = #tpu.dot_dimension_numbers<[1], [0], [0], [1], [0, 0, 1, 1], [], []>} : vector<128x128xf32>, vector<128x128xf32>, vector<128x128xf32> -> vector<128x128xf32>
      %c0_18 = arith.constant 0 : index
      %c0_19 = arith.constant 0 : index
      %23 = vector.load %arg7[%c0_18, %c0_19] : memref<128x128xf32, #tpu.memory_space<vmem>>, vector<128x128xf32>
      tpu.vector_store %arg7[%c0_18, %c0_19], %22 {strides = array<i32>} : memref<128x128xf32, #tpu.memory_space<vmem>>, vector<128x128xf32>,
    } else {
    }
    return
  }
  func.func @transform_0(%arg0: i32, %arg1: i32, %arg2: memref<1xf32, #tpu.memory_space<smem>>) -> (i32, i32) {
    %c0_i32 = arith.constant 0 : i32
    return %arg0, %arg1 : i32, i32
  }
  func.func @transform_1(%arg0: i32, %arg1: i32, %arg2: memref<1xf32, #tpu.memory_space<smem>>) -> (i32, i32) {
    %c0_i32 = arith.constant 0 : i32
    %c0_i32_0 = arith.constant 0 : i32
    return %arg1, %c0_i32 : i32, i32
  }
  func.func @transform_2(%arg0: i32, %arg1: i32, %arg2: memref<1xf32, #tpu.memory_space<smem>>) -> (i32, i32) {
    %c0_i32 = arith.constant 0 : i32
    %c0_i32_0 = arith.constant 0 : i32
    return %arg0, %c0_i32 : i32, i32
  }
  func.func @transform_3(%arg0: i32, %arg1: i32, %arg2: memref<1xf32, #tpu.memory_space<smem>>) -> (i32, i32) {
    %c0_i32 = arith.constant 0 : i32
    %c0_i32_0 = arith.constant 0 : i32
    %c0_i32_1 = arith.constant 0 : i32
    return %c0_i32, %c0_i32_0 : i32, i32
  }
  func.func @transform_4(%arg0: i32, %arg1: i32, %arg2: memref<1xf32, #tpu.memory_space<smem>>) -> (i32, i32) {
    %c0_i32 = arith.constant 0 : i32
    %c0_i32_0 = arith.constant 0 : i32
    return %arg0, %c0_i32 : i32, i32
  }
}

</mosaic_0001>

<bundles_post_ra>
// kernel: tpu_custom_call.1
= control target key start
LH: loop header
LB: loop body
LE: loop exit
PB: predicated region body
PF: predicated region fallthrough
CT: control target
= control target key end

     0   :  { %s1876_s0 = inlined_call_operand.<no memory space> [shape: f32[1], index: 0, kind: input, shape index: {}]   ;;  %s1877_s1 = inlined_call_operand.hbm [shape: f32[256,256], index: 1, kind: input, shape index: {}]   ;;  %s1878_s2 = inlined_call_operand.hbm [shape: f32[256,128], index: 2, kind: input, shape index: {}]   ;;  %s1879_s3 = inlined_call_operand.hbm [shape: f32[256,128], index: 3, kind: input, shape index: {}]   ;;  %s1880_s4 = inlined_call_operand.hbm [shape: f32[128,128], index: 4, kind: input, shape index: {}]   ;;  %s1881_s5 = inlined_call_operand.hbm [shape: f32[256,128], index: 5, kind: output, shape index: {}]  }
   0x1   :  { %1891 = sst [smem:[#allocation26_spill]] %s1877_s1 }
   0x2   :  { %1892 = sst [smem:[#allocation27_spill]] %s1878_s2 }
   0x3   :  { %1893 = sst [smem:[#allocation28_spill]] %s1880_s4 }
   0x4   :  { %1894 = sst [smem:[#allocation29_spill]] %s1881_s5 }
   0x5   :  { %10 = sst [smem:[#allocation4]] %s1876_s0 }
   0x6   :  { %11 = vsyncpa [#allocation6], 0 }
   0x7   :  { %13 = vsyncpa [#allocation6 + $0x1], 0 }
   0x8   :  { %14 = vsyncpa [#allocation9], 0 }
   0x9   :  { %16 = vsyncpa [#allocation9 + $0x1], 0 }
   0xa   :  { %17 = vsyncpa [#allocation12], 0 }
   0xb   :  { %18 = vsyncpa [#allocation7], 0 }
   0xc   :  { %20 = vsyncpa [#allocation7 + $0x1], 0  ;;  %s1444_s20 = smov 0   ;;  %s1446_s21 = smov 0  }
   0xd   :  { %s1448_s22 = smov 0   ;;  %s1450_s23 = smov 0  }
   0xe   :  { %s1452_s24 = smov 0   ;;  %s1454_s25 = smov 0  }
   0xf   :  { %s1456_s0 = smov 0   ;;  %s1458_s26 = smov 0  }
  0x10   :  { %s1460_s27 = smov 0   ;;  %s1462_s28 = smov 0  }
  0x11   :  { %s1464_s29 = smov 0   ;;  %s1466_s30 = smov 0  }
  0x12   :  { %s1468_s6 = smov 0   ;;  %s1470_s7 = smov 0  }
  0x13 LB: > { %1895 = sst [smem:[#allocation19_spill]] %s1370_s25  ;;  %s35_s8 = sadd.s32 1, %s1394_s30  ;;  %s1402_s7 = sphi %s1470_s7, %s26_s7   ;;  %s1398_s6 = sphi %s1468_s6, %s1935_s6   ;;  %s1394_s30 = sphi %s1466_s30, %s1923_s30   ;;  %s1390_s29 = sphi %s1464_s29, %s1934_s29   ;;  %s1386_s28 = sphi %s1462_s28, %s1922_s28   ;;  %s1382_s27 = sphi %s1460_s27, %s1933_s27   ;;  %s1378_s26 = sphi %s1458_s26, %s1932_s26   ;;  %s1374_s0 = sphi %s1456_s0, %s1931_s0   ;;  %s1370_s25 = sphi %s1454_s25, %s1920_s25   ;;  %s1366_s24 = sphi %s1452_s24, %s1930_s24   ;;  %s1362_s23 = sphi %s1450_s23, %s1929_s23   ;;  %s1358_s22 = sphi %s1448_s22, %s1928_s22   ;;  %s1354_s21 = sphi %s1446_s21, %s1927_s21   ;;  %s1350_s20 = sphi %s1444_s20, %s1926_s20  }
  0x14   : > { %1896 = sst [smem:[#allocation20_spill]] %s1390_s29  ;;  %s38_s9 = sadd.s32 1, %s1398_s6 }
  0x15   : > { %1897 = sst [smem:[#allocation21_spill]] %s1394_s30  ;;  %p36_p0 = scmp.ge.s32.totalorder %s35_s8, 2 }
  0x16   : > { %p55_p1 = scmp.eq.s32.totalorder %s1402_s7, 0  ;;  %s73_s10 = sadd.s32 1, %s1370_s25 }
  0x17   : > { %p80_p2 = scmp.ne.s32.totalorder %s1370_s25, %s1366_s24  ;;  %s1937_s8 = smov (%p36_p0, %s35_s8), 0 }
  0x18   : > { %1898 = sst [smem:[#allocation22_spill]] %s1937_s8  ;;  %s1939_s9 = smov (!%p36_p0, %s38_s9), %s1398_s6 }
  0x19   : > { %s43_s11 = ssub.s32 %s1394_s30, %s1937_s8  ;;  %p1527_p3 = por %p80_p2, %p55_p1 }
  0x1a   : > { %p40_p4 = scmp.ge.s32.totalorder %s1939_s9, 2  ;;  %p71_p5 = scmp.eq.s32.totalorder %s43_s11, 0 }
  0x1b   : > { %p86_p6 = scmp.ne.s32.totalorder %s1366_s24, %s1362_s23  ;;  %p1002_p9 = scmp.lt.s32.totalorder %s1402_s7, 4 }
  0x1c   : > { %s1941_s9 = smov (%p40_p4, %s1939_s9), 0  ;;  %s221_s17 = sand.u32 1, %s1402_s7  }
  0x1d   : > { %1900 = sst [smem:[#allocation23_spill]] %s1941_s9  ;;  %s1540_s14 = ssub.s32 %s1398_s6, %s1941_s9 }
  0x1e   : > { %s1536_s13 = scalar_select %p71_p5, %s1370_s25, %s73_s10  }
  0x1f   : > { %s44_s15 = sor.u32 %s43_s11, %s1540_s14  ;;  %p97_p7 = scmp.eq.s32.totalorder %s1540_s14, 0 }
  0x20   : > { %1901 = sst [smem:[#allocation24_spill]] %s1536_s13  ;;  %p1544_p8 = scmp.eq.s32.totalorder %s44_s15, 0 }
  0x21   : > { %s223_s18 = sand.u32 1, %s1370_s25   ;;  %s872_s10 = sshll.u32 %s1394_s30, 7 }
  0x22   : > { %s852_s19 = sshll.u32 %s223_s18, 7  ;;  %s1903_s2 = sld [smem:[#allocation27_spill]] }
  0x23   : > { %s225_s5 = scalar_lea.vmem [#allocation8], %s852_s19  ;;  %p991_p10 = pnand %p1002_p9, %p1527_p3 }
  0x24   : > { %s233_s15 = sshll.u32 %s225_s5, 4  ;;  %s1559_s29 = scalar_lea.sflag [#allocation9], %s221_s17  ;;  %s234_s15 = int_to_ptr.vmem [resolvable:$true] %s233_s15 }
  0x25   : > { %s1886_s18 = smov 128   ;;  %s1888_s25 = smov 8  }
  0x26   : > { %s1566_s8 = sadd.s32 4294967295, %s1402_s7   ;;  %p845_p11 = scmp.ge.s32.totalorder %s1402_s7, 1 }
  0x27   : > { %p61_p12 = scmp.eq.s32.totalorder %s1566_s8, 0  ;;  %p157_p13 = scmp.eq.s32.totalorder %s1566_s8, 3 }
  0x28   : > { %s230_s9 = scalar_lea.hbm %s1903_s2, %s872_s10  ;;  %p170_p0 = scmp.lt.s32.totalorder %s1402_s7, 5 }
  0x29   : > { %s231_s11 = sshll.u32 %s230_s9, 4  ;;  %p1577_p2 = por %p86_p6, %p61_p12  ;;  %s232_s11 = int_to_ptr.hbm [resolvable:$true] %s231_s11 }
  0x2a   : > { %993 = dma.hbm_to_vmem [thread:$0]  (!%p991_p10), %s232_s11, 2048, %s234_s15, %s1559_s29, %s1886_s18, %s1886_s18, %s1888_s25  }
  0x2b   : > { %s1905_s4 = sld [smem:[#allocation28_spill]]  ;;  %p1584_p3 = pnand %p845_p11, %p170_p0 }
  0x2c   : > { %s1406_s23 = smov [#allocation11]   ;;  %s47_s10 = sadd.s32 1, %s1382_s27 }
  0x2d   : > { %p983_p4 = pneg %p1584_p3  ;;  %s183_s19 = sshll.u32 %s1406_s23, 4  ;;  %s184_s19 = int_to_ptr.vmem [resolvable:$true] %s183_s19 }
  0x2e   : > { %p54_p6 = scmp.ne.s32.totalorder %s1382_s27, %s1378_s26  ;;  %p60_p11 = scmp.ne.s32.totalorder %s1378_s26, %s1374_s0 }
  0x2f   : > { %p984_p5 = pnand %p983_p4, %p61_p12  ;;  %s197_s9 = sand.u32 1, %s1382_s27  }
  0x30   : > { %s1601_s11 = scalar_select %p1544_p8, %s1382_s27, %s47_s10  }
  0x31   : > { %s181_s13 = sshll.u32 %s1905_s4, 4  ;;  %p1605_p10 = por %p55_p1, %p54_p6  ;;  %s182_s13 = int_to_ptr.hbm [resolvable:$true] %s181_s13 }
  0x32   : > { %986 = dma.hbm_to_vmem [thread:$0]  (!%p984_p5), %s182_s13, 2048, %s184_s19, [#allocation12], %s1886_s18, %s1886_s18, %s1888_s25  }
  0x33   : > { %1907 = sst [smem:[#allocation25_spill]] %s1601_s11  ;;  %s871_s12 = sshll.u32 %s1398_s6, 5 }
  0x34   : > { %p1615_p0 = por %p61_p12, %p60_p11  ;;  %s848_s16 = sshll.u32 %s197_s9, 7 }
  0x35   : > { %s206_s23 = sadd.s32 %s1394_s30, %s871_s12  ;;  %s1910_s1 = sld [smem:[#allocation26_spill]] }
  0x36   : > { %s851_s19 = sshll.u32 %s206_s23, 3  ;;  %s201_s25 = scalar_lea.vmem [#allocation5], %s848_s16 }
  0x37   : > { %s211_s2 = sshll.u32 %s201_s25, 4  ;;  %p988_p8 = pnand %p1002_p9, %p1605_p10  ;;  %s212_s2 = int_to_ptr.vmem [resolvable:$true] %s211_s2 }
  0x38   : > { %s198_s12 = scalar_lea.sflag [#allocation6], %s197_s9  ;;  %s1407_s30 = smov 256  }
  0x39   : > { %s1911_s23 = smov 8   ;;  %s1912_s11 = smov 128  }
  0x3a   : > { %s844_s10 = sadd.s32 4294967294, %s1402_s7   ;;  %p106_p4 = scmp.ne.s32.totalorder %s1358_s22, %s1354_s21 }
  0x3b   : > { %s208_s18 = scalar_lea.hbm %s1910_s1, %s851_s19  ;;  %s99_s19 = sadd.s32 1, %s1358_s22 }
  0x3c   : > { %s209_s4 = sshll.u32 %s208_s18, 4  ;;  %p112_p5 = scmp.ne.s32.totalorder %s1354_s21, %s1350_s20  ;;  %s210_s4 = int_to_ptr.hbm [resolvable:$true] %s209_s4 }
  0x3d   : > { %990 = dma.hbm_to_vmem [thread:$0]  (!%p988_p8), %s210_s4, 2048, %s212_s2, %s198_s12, %s1407_s30, %s1912_s11, %s1911_s23  }
  0x3e   : > { %s1634_s16 = scalar_select %p97_p7, %s1358_s22, %s99_s19  }
  0x3f   : > { %p163_p6 = scmp.eq.s32.totalorder %s844_s10, 3  ;;  %s245_s25 = sand.u32 1, %s1358_s22  }
  0x40   : > { %p108_p11 = por %p106_p4, %p55_p1  ;;  %p1645_p10 = por %p112_p5, %p61_p12 }
  0x41   : > { %p1651_p8 = por %p157_p13, %p106_p4  ;;  %p1655_p7 = por %p163_p6, %p112_p5 }
  0x42   : > { %s855_s30 = sshll.u32 %s245_s25, 7  ;;  %s873_s14 = sshll.u32 %s1398_s6, 7 }
  0x43   : > { %s252_s0 = scalar_lea.hbm %s1879_s3, %s873_s14  ;;  %s247_s10 = scalar_lea.vmem [#allocation10], %s855_s30 }
  0x44   : > { %s253_s12 = sshll.u32 %s252_s0, 4  ;;  %s255_s19 = sshll.u32 %s247_s10, 4  ;;  %s254_s12 = int_to_ptr.hbm [resolvable:$true] %s253_s12  ;;  %s256_s19 = int_to_ptr.vmem [resolvable:$true] %s255_s19 }
  0x45   : > { %p994_p1 = pnand %p1002_p9, %p108_p11  ;;  %267 = sbr.rel (%p1584_p3) target bundleno = 513 (0x201), region = 36 }
  0x46   : > { %s269_s25 = sand.u32 (!%p1584_p3), 1, %s1378_s26  }
  0x47   : > { %996 = dma.hbm_to_vmem [thread:$0]  (!%p994_p1), %s254_s12, 2048, %s256_s19, %s1559_s29, %s1912_s11, %s1912_s11, %s1911_s23  }
  0x48   : > { %s859_s1 = sshll.u32 (!%p1584_p3), %s269_s25, 7  ;;  %s270_s15 = scalar_lea.sflag (!%p1584_p3), [#allocation6], %s269_s25 }
  0x49   : > { %s1672_s14 = scalar_lea.vmem (!%p1584_p3), [#allocation5], %s859_s1 }
  0x4a   : > { %1329 = dma.done.wait (%p1615_p0), %s270_s15, 2048  }
  0x4b   : > { %1331 = vsyncadd (%p1615_p0), %s270_s15, 4294965248  ;;  %s279_s30 = sand.u32 1, %s1566_s8   ;;  %s281_s29 = sand.u32 1, %s1366_s24  }
  0x4c   : > { %s860_s11 = sshll.u32 %s281_s29, 7  ;;  %s280_s17 = scalar_lea.sflag [#allocation9], %s279_s30 }
  0x4d   : > { %s1680_s23 = scalar_lea.vmem [#allocation8], %s860_s11 }
  0x4e   : > { %1333 = dma.done.wait (%p1577_p2), %s280_s17, 2048  }
  0x4f   : > { %1335 = vsyncadd (%p1577_p2), %s280_s17, 4294965248  ;;  %s291_s1 = sand.u32 1, %s1354_s21  }
  0x50   : > { %s861_s13 = sshll.u32 %s291_s1, 7 }
  0x51   : > { %s1689_s9 = scalar_lea.vmem [#allocation10], %s861_s13 }
  0x52   : > { %1337 = dma.done.wait (%p1645_p10), %s280_s17, 2048  }
  0x53   : > { %1339 = vsyncadd (%p1645_p10), %s280_s17, 4294965248 }
  0x54   : > { %1341 = dma.done.wait (%p61_p12), [#allocation12], 2048  }
  0x55   : > { %1343 = vsyncadd (%p61_p12), [#allocation12], 4294965248  ;;  %s1699_s5 = scalar_lea.vmem [#allocation13], %s861_s13  ;;  %p864_p9 = scmp.ne.s32.totalorder %s1386_s28, 0 }
  0x57   : > { %341 = sbr.rel (%p864_p9) target bundleno = 109 (0x6d), region = 56 }
  0x5c   : > { %v1408_v0 = vmov 0.0  }
  0x5d   : > { %342 = vst [vmem:[#allocation2 + $0x30] sm:$0xff] %v1408_v0 }
  0x5e   : > { %343 = vst [vmem:[#allocation2] sm:$0xff] %v1408_v0 }
  0x5f   : > { %344 = vst [vmem:[#allocation2 + $0x58] sm:$0xff] %v1408_v0 }
  0x60   : > { %345 = vst [vmem:[#allocation2 + $0x18] sm:$0xff] %v1408_v0 }
  0x61   : > { %346 = vst [vmem:[#allocation2 + $0x50] sm:$0xff] %v1408_v0 }
  0x62   : > { %347 = vst [vmem:[#allocation2 + $0x68] sm:$0xff] %v1408_v0 }
  0x63   : > { %348 = vst [vmem:[#allocation2 + $0x8] sm:$0xff] %v1408_v0 }
  0x64   : > { %349 = vst [vmem:[#allocation2 + $0x48] sm:$0xff] %v1408_v0 }
  0x65   : > { %350 = vst [vmem:[#allocation2 + $0x40] sm:$0xff] %v1408_v0 }
  0x66   : > { %351 = vst [vmem:[#allocation2 + $0x20] sm:$0xff] %v1408_v0 }
  0x67   : > { %352 = vst [vmem:[#allocation2 + $0x10] sm:$0xff] %v1408_v0 }
  0x68   : > { %353 = vst [vmem:[#allocation2 + $0x38] sm:$0xff] %v1408_v0 }
  0x69   : > { %354 = vst [vmem:[#allocation2 + $0x60] sm:$0xff] %v1408_v0 }
  0x6a   : > { %355 = vst [vmem:[#allocation2 + $0x70] sm:$0xff] %v1408_v0 }
  0x6b   : > { %356 = vst [vmem:[#allocation2 + $0x78] sm:$0xff] %v1408_v0 }
  0x6c   : > { %357 = vst [vmem:[#allocation2 + $0x28] sm:$0xff] %v1408_v0 }
  0x6d PF: > { %v405_v1 = vld [vmem:[%s1680_s23 + $0x78] sm:$0xff]  ;;  %v404_v2 = vld [vmem:[%s1680_s23 + $0x70] sm:$0xff]  ;;  %v403_v3 = vld [vmem:[%s1680_s23 + $0x68] sm:$0xff]  ;;  %p865_p12 = scmp.ne.s32.totalorder %s1386_s28, 1 }
  0x6e   : > { %876 = vmatpush.msra.mxu2 %v405_v1  ;;  %877 = vmatpush.msra.mxu3 %v405_v1  ;;  %v402_v4 = vld [vmem:[%s1680_s23 + $0x60] sm:$0xff]  ;;  %v401_v5 = vld [vmem:[%s1680_s23 + $0x58] sm:$0xff]  ;;  %v400_v6 = vld [vmem:[%s1680_s23 + $0x50] sm:$0xff]  ;;  %s1735_s28 = sld [smem:[#allocation4]] (!%p865_p12) }
  0x6f   : > { %406 = vmatpush.msra.mxu0 %v405_v1  ;;  %875 = vmatpush.msra.mxu1 %v405_v1  ;;  %v399_v7 = vld [vmem:[%s1680_s23 + $0x48] sm:$0xff]  ;;  %v398_v8 = vld [vmem:[%s1680_s23 + $0x40] sm:$0xff]  ;;  %v397_v9 = vld [vmem:[%s1680_s23 + $0x38] sm:$0xff] }
  0x70   : > { %879 = vmatpush.msra.mxu2 %v404_v2  ;;  %880 = vmatpush.msra.mxu3 %v404_v2  ;;  %v396_v10 = vld [vmem:[%s1680_s23 + $0x30] sm:$0xff]  ;;  %v395_v11 = vld [vmem:[%s1680_s23 + $0x28] sm:$0xff]  ;;  %v394_v12 = vld [vmem:[%s1680_s23 + $0x20] sm:$0xff] }
  0x71   : > { %407 = vmatpush.msra.mxu0 %v404_v2  ;;  %878 = vmatpush.msra.mxu1 %v404_v2  ;;  %v393_v13 = vld [vmem:[%s1680_s23 + $0x18] sm:$0xff]  ;;  %v392_v14 = vld [vmem:[%s1680_s23 + $0x10] sm:$0xff]  ;;  %v391_v15 = vld [vmem:[%s1680_s23 + $0x8] sm:$0xff] }
  0x72   : > { %882 = vmatpush.msra.mxu2 %v403_v3  ;;  %883 = vmatpush.msra.mxu3 %v403_v3  ;;  %v390_v16 = vld [vmem:[%s1680_s23] sm:$0xff]  ;;  %v383_v21 = vld [vmem:[%s1672_s14 + $0x48] sm:$0xff]  ;;  %v384_v25 = vld [vmem:[%s1672_s14 + $0x50] sm:$0xff] }
  0x73   : > { %408 = vmatpush.msra.mxu0 %v403_v3  ;;  %881 = vmatpush.msra.mxu1 %v403_v3  ;;  %v382_v17 = vld [vmem:[%s1672_s14 + $0x40] sm:$0xff]  ;;  %v387_v22 = vld [vmem:[%s1672_s14 + $0x68] sm:$0xff]  ;;  %v388_v26 = vld [vmem:[%s1672_s14 + $0x70] sm:$0xff] }
  0x74   : > { %885 = vmatpush.msra.mxu2 %v402_v4  ;;  %886 = vmatpush.msra.mxu3 %v402_v4  ;;  %v386_v18 = vld [vmem:[%s1672_s14 + $0x60] sm:$0xff]  ;;  %v375_v23 = vld [vmem:[%s1672_s14 + $0x8] sm:$0xff]  ;;  %v376_v27 = vld [vmem:[%s1672_s14 + $0x10] sm:$0xff]  ;;  %s508_s8 = ssub.f32 (!%p865_p12), 1.0, %s1735_s28 }
  0x75   : > { %409 = vmatpush.msra.mxu0 %v402_v4  ;;  %884 = vmatpush.msra.mxu1 %v402_v4  ;;  %v374_v19 = vld [vmem:[%s1672_s14] sm:$0xff]  ;;  %v379_v24 = vld [vmem:[%s1672_s14 + $0x28] sm:$0xff]  ;;  %v380_v28 = vld [vmem:[%s1672_s14 + $0x30] sm:$0xff] }
  0x76   : > { %888 = vmatpush.msra.mxu2 %v401_v5  ;;  %889 = vmatpush.msra.mxu3 %v401_v5  ;;  %v378_v20 = vld [vmem:[%s1672_s14 + $0x20] sm:$0xff]  ;;  %v385_v29 = vld [vmem:[%s1672_s14 + $0x58] sm:$0xff]  ;;  %v358_v33 = vld [vmem:[#allocation2 + $0x30] sm:$0xff] }
  0x77   : > { %410 = vmatpush.msra.mxu0 %v401_v5  ;;  %887 = vmatpush.msra.mxu1 %v401_v5  ;;  %v389_v30 = vld [vmem:[%s1672_s14 + $0x78] sm:$0xff]  ;;  %v362_v34 = vld [vmem:[#allocation2 + $0x50] sm:$0xff]  ;;  %v366_v39 = vld [vmem:[#allocation2 + $0x40] sm:$0xff] }
  0x78   : > { %891 = vmatpush.msra.mxu2 %v400_v6  ;;  %892 = vmatpush.msra.mxu3 %v400_v6  ;;  %v377_v31 = vld [vmem:[%s1672_s14 + $0x18] sm:$0xff]  ;;  %v370_v40 = vld [vmem:[#allocation2 + $0x60] sm:$0xff]  ;;  %v363_v46 = vld [vmem:[#allocation2 + $0x68] sm:$0xff] }
  0x79   : > { %411 = vmatpush.msra.mxu0 %v400_v6  ;;  %890 = vmatpush.msra.mxu1 %v400_v6  ;;  %v381_v32 = vld [vmem:[%s1672_s14 + $0x38] sm:$0xff]  ;;  %v359_v45 = vld [vmem:[#allocation2] sm:$0xff]  ;;  %v371_v52 = vld [vmem:[#allocation2 + $0x70] sm:$0xff] }
  0x7a   : > { %894 = vmatpush.msra.mxu2 %v399_v7  ;;  %895 = vmatpush.msra.mxu3 %v399_v7  ;;  %v367_v51 = vld [vmem:[#allocation2 + $0x20] sm:$0xff]  ;;  %v360_v57 = vld [vmem:[#allocation2 + $0x58] sm:$0xff]  ;;  %v364_v58 = vld [vmem:[#allocation2 + $0x8] sm:$0xff] }
  0x7b   : > { %412 = vmatpush.msra.mxu0 %v399_v7  ;;  %893 = vmatpush.msra.mxu1 %v399_v7  ;;  %v368_v63 = vld [vmem:[#allocation2 + $0x10] sm:$0xff]  ;;  %v372_v0 = vld [vmem:[#allocation2 + $0x78] sm:$0xff]  ;;  %v365_v6 = vld [vmem:[#allocation2 + $0x48] sm:$0xff] }
  0x7c   : > { %897 = vmatpush.msra.mxu2 %v398_v8  ;;  %898 = vmatpush.msra.mxu3 %v398_v8  ;;  %v361_v5 = vld [vmem:[#allocation2 + $0x18] sm:$0xff] }
  0x7d   : > { %413 = vmatpush.msra.mxu0 %v398_v8  ;;  %896 = vmatpush.msra.mxu1 %v398_v8 }
  0x7e   : > { %900 = vmatpush.msra.mxu2 %v397_v9  ;;  %901 = vmatpush.msra.mxu3 %v397_v9 }
  0x7f   : > { %414 = vmatpush.msra.mxu0 %v397_v9  ;;  %899 = vmatpush.msra.mxu1 %v397_v9 }
  0x80   : > { %903 = vmatpush.msra.mxu2 %v396_v10  ;;  %904 = vmatpush.msra.mxu3 %v396_v10 }
  0x81   : > { %415 = vmatpush.msra.mxu0 %v396_v10  ;;  %902 = vmatpush.msra.mxu1 %v396_v10 }
  0x82   : > { %906 = vmatpush.msra.mxu2 %v395_v11  ;;  %907 = vmatpush.msra.mxu3 %v395_v11 }
  0x83   : > { %416 = vmatpush.msra.mxu0 %v395_v11  ;;  %905 = vmatpush.msra.mxu1 %v395_v11  ;;  %v369_v11 = vld [vmem:[#allocation2 + $0x38] sm:$0xff] }
  0x84   : > { %909 = vmatpush.msra.mxu2 %v394_v12  ;;  %910 = vmatpush.msra.mxu3 %v394_v12 }
  0x85   : > { %417 = vmatpush.msra.mxu0 %v394_v12  ;;  %908 = vmatpush.msra.mxu1 %v394_v12  ;;  %v373_v12 = vld [vmem:[#allocation2 + $0x28] sm:$0xff] }
  0x86   : > { %912 = vmatpush.msra.mxu2 %v393_v13  ;;  %913 = vmatpush.msra.mxu3 %v393_v13 }
  0x87   : > { %418 = vmatpush.msra.mxu0 %v393_v13  ;;  %911 = vmatpush.msra.mxu1 %v393_v13 }
  0x88   : > { %915 = vmatpush.msra.mxu2 %v392_v14  ;;  %916 = vmatpush.msra.mxu3 %v392_v14 }
  0x89   : > { %419 = vmatpush.msra.mxu0 %v392_v14  ;;  %914 = vmatpush.msra.mxu1 %v392_v14 }
  0x8a   : > { %918 = vmatpush.msra.mxu2 %v391_v15  ;;  %919 = vmatpush.msra.mxu3 %v391_v15 }
  0x8b   : > { %420 = vmatpush.msra.mxu0 %v391_v15  ;;  %917 = vmatpush.msra.mxu1 %v391_v15 }
  0x8c   : > { %921 = vmatpush.msra.mxu2 %v390_v16  ;;  %922 = vmatpush.msra.mxu3 %v390_v16 }
  0x8d   : > { %446 = vmatmul.f32.vlgmr.msra.gmra.mxu2 %v382_v17  ;;  %458 = vmatmul.f32.vlgmr.msra.gmra.mxu3 %v386_v18 }
  0x8e   : > { %421 = vmatpush.msra.mxu0 %v390_v16  ;;  %920 = vmatpush.msra.mxu1 %v390_v16 }
  0x8f   : > { %422 = vmatmul.f32.vlgmr.msra.gmra.mxu0 %v374_v19  ;;  %434 = vmatmul.f32.vlgmr.msra.gmra.mxu1 %v378_v20 }
  0x95   : > { %449 = vmatmul.f32.gmra.mxu2 %v383_v21  ;;  %461 = vmatmul.f32.gmra.mxu3 %v387_v22 }
  0x97   : > { %425 = vmatmul.f32.gmra.mxu0 %v375_v23  ;;  %437 = vmatmul.f32.gmra.mxu1 %v379_v24 }
  0x9d   : > { %452 = vmatmul.f32.gmra.mxu2 %v384_v25  ;;  %464 = vmatmul.f32.gmra.mxu3 %v388_v26 }
  0x9f   : > { %428 = vmatmul.f32.gmra.mxu0 %v376_v27  ;;  %440 = vmatmul.f32.gmra.mxu1 %v380_v28 }
  0xa5   : > { %455 = vmatmul.f32.gmra.mxu2 %v385_v29  ;;  %467 = vmatmul.f32.gmra.mxu3 %v389_v30 }
  0xa7   : > { %431 = vmatmul.f32.gmra.mxu0 %v377_v31  ;;  %443 = vmatmul.f32.gmra.mxu1 %v381_v32 }
 0x10c   : > { %v423_v35 = vpop.f32.mrf.mxu0  ;;  %v435_v36 = vpop.f32.mrf.mxu1 }
 0x10d   : > { %v471_v37 = vadd.f32 %v423_v35, %v358_v33  ;;  %v475_v38 = vadd.f32 %v435_v36, %v362_v34 }
 0x10f   : > { %487 = vst [vmem:[#allocation2 + $0x30] sm:$0xff] %v471_v37 }
 0x110   : > { %491 = vst [vmem:[#allocation2 + $0x50] sm:$0xff] %v475_v38  ;;  %v447_v41 = vpop.f32.mrf.mxu2  ;;  %v459_v42 = vpop.f32.mrf.mxu3 }
 0x111   : > { %v479_v43 = vadd.f32 %v447_v41, %v366_v39  ;;  %v483_v44 = vadd.f32 %v459_v42, %v370_v40 }
 0x113   : > { %495 = vst [vmem:[#allocation2 + $0x40] sm:$0xff] %v479_v43 }
 0x114   : > { %499 = vst [vmem:[#allocation2 + $0x60] sm:$0xff] %v483_v44  ;;  %v426_v47 = vpop.f32.mrf.mxu0  ;;  %v438_v48 = vpop.f32.mrf.mxu1 }
 0x115   : > { %v472_v49 = vadd.f32 %v426_v47, %v359_v45  ;;  %v476_v50 = vadd.f32 %v438_v48, %v363_v46 }
 0x117   : > { %488 = vst [vmem:[#allocation2] sm:$0xff] %v472_v49 }
 0x118   : > { %492 = vst [vmem:[#allocation2 + $0x68] sm:$0xff] %v476_v50  ;;  %v450_v53 = vpop.f32.mrf.mxu2  ;;  %v462_v54 = vpop.f32.mrf.mxu3 }
 0x119   : > { %v480_v55 = vadd.f32 %v450_v53, %v367_v51  ;;  %v484_v56 = vadd.f32 %v462_v54, %v371_v52 }
 0x11b   : > { %496 = vst [vmem:[#allocation2 + $0x20] sm:$0xff] %v480_v55 }
 0x11c   : > { %500 = vst [vmem:[#allocation2 + $0x70] sm:$0xff] %v484_v56  ;;  %v429_v59 = vpop.f32.mrf.mxu0  ;;  %v441_v60 = vpop.f32.mrf.mxu1 }
 0x11d   : > { %v473_v61 = vadd.f32 %v429_v59, %v360_v57  ;;  %v477_v62 = vadd.f32 %v441_v60, %v364_v58 }
 0x11f   : > { %489 = vst [vmem:[#allocation2 + $0x58] sm:$0xff] %v473_v61 }
 0x120   : > { %493 = vst [vmem:[#allocation2 + $0x8] sm:$0xff] %v477_v62  ;;  %v453_v1 = vpop.f32.mrf.mxu2  ;;  %v465_v2 = vpop.f32.mrf.mxu3 }
 0x121   : > { %v481_v3 = vadd.f32 %v453_v1, %v368_v63  ;;  %v485_v4 = vadd.f32 %v465_v2, %v372_v0 }
 0x123   : > { %497 = vst [vmem:[#allocation2 + $0x10] sm:$0xff] %v481_v3 }
 0x124   : > { %501 = vst [vmem:[#allocation2 + $0x78] sm:$0xff] %v485_v4  ;;  %v432_v7 = vpop.f32.mrf.mxu0  ;;  %v444_v8 = vpop.f32.mrf.mxu1 }
 0x125   : > { %v474_v9 = vadd.f32 %v432_v7, %v361_v5  ;;  %v478_v10 = vadd.f32 %v444_v8, %v365_v6 }
 0x127   : > { %490 = vst [vmem:[#allocation2 + $0x18] sm:$0xff] %v474_v9 }
 0x128   : > { %494 = vst [vmem:[#allocation2 + $0x48] sm:$0xff] %v478_v10  ;;  %v456_v13 = vpop.f32.mrf.mxu2  ;;  %v468_v14 = vpop.f32.mrf.mxu3  ;;  %506 = sbr.rel (%p865_p12) target bundleno = 491 (0x1eb), region = 60 }
 0x129   : > { %v482_v15 = vadd.f32 %v456_v13, %v369_v11  ;;  %v486_v16 = vadd.f32 %v468_v14, %v373_v12 }
 0x12b   : > { %498 = vst [vmem:[#allocation2 + $0x38] sm:$0xff] %v482_v15 }
 0x12c   : > { %502 = vst [vmem:[#allocation2 + $0x28] sm:$0xff] %v486_v16 }
 0x12d   : > { %v606_v17 = vld [vmem:[#allocation11 + $0x78] sm:$0xff]  ;;  %v605_v18 = vld [vmem:[#allocation11 + $0x70] sm:$0xff]  ;;  %v604_v19 = vld [vmem:[#allocation11 + $0x68] sm:$0xff]  ;;  %v1740_v30 = vstv %s1735_s28  ;;  %v1742_v32 = vstv %s508_s8 }
 0x12e   : > { %924 = vmatpush.msra.mxu2 %v606_v17  ;;  %925 = vmatpush.msra.mxu3 %v606_v17  ;;  %v603_v20 = vld [vmem:[#allocation11 + $0x60] sm:$0xff]  ;;  %v602_v21 = vld [vmem:[#allocation11 + $0x58] sm:$0xff]  ;;  %v601_v22 = vld [vmem:[#allocation11 + $0x50] sm:$0xff] }
 0x12f   : > { %607 = vmatpush.msra.mxu0 %v606_v17  ;;  %923 = vmatpush.msra.mxu1 %v606_v17  ;;  %v600_v23 = vld [vmem:[#allocation11 + $0x48] sm:$0xff]  ;;  %v599_v24 = vld [vmem:[#allocation11 + $0x40] sm:$0xff]  ;;  %v598_v25 = vld [vmem:[#allocation11 + $0x38] sm:$0xff] }
 0x130   : > { %927 = vmatpush.msra.mxu2 %v605_v18  ;;  %928 = vmatpush.msra.mxu3 %v605_v18  ;;  %v597_v26 = vld [vmem:[#allocation11 + $0x30] sm:$0xff]  ;;  %v596_v27 = vld [vmem:[#allocation11 + $0x28] sm:$0xff]  ;;  %v595_v28 = vld [vmem:[#allocation11 + $0x20] sm:$0xff] }
 0x131   : > { %608 = vmatpush.msra.mxu0 %v605_v18  ;;  %926 = vmatpush.msra.mxu1 %v605_v18  ;;  %v550_v29 = vld [vmem:[%s1689_s9 + $0x40] sm:$0xff]  ;;  %v594_v35 = vld [vmem:[#allocation11 + $0x18] sm:$0xff]  ;;  %v509_v38 = vld [vmem:[#allocation2 + $0x30] sm:$0xff] }
 0x132   : > { %930 = vmatpush.msra.mxu2 %v604_v19  ;;  %931 = vmatpush.msra.mxu3 %v604_v19  ;;  %v517_v31 = vld [vmem:[#allocation2 + $0x40] sm:$0xff]  ;;  %v567_v37 = vmul.f32 %v1740_v30, %v550_v29  ;;  %v513_v39 = vld [vmem:[#allocation2 + $0x50] sm:$0xff]  ;;  %v592_v46 = vld [vmem:[#allocation11 + $0x8] sm:$0xff]  ;;  %v526_v47 = vmul.f32 %v1742_v32, %v509_v38 }
 0x133   : > { %609 = vmatpush.msra.mxu0 %v604_v19  ;;  %929 = vmatpush.msra.mxu1 %v604_v19  ;;  %v521_v33 = vld [vmem:[#allocation2 + $0x60] sm:$0xff]  ;;  %v593_v41 = vld [vmem:[#allocation11 + $0x10] sm:$0xff]  ;;  %v534_v42 = vmul.f32 %v1742_v32, %v517_v31  ;;  %v530_v48 = vmul.f32 %v1742_v32, %v513_v39  ;;  %v551_v54 = vld [vmem:[%s1689_s9 + $0x48] sm:$0xff] }
 0x134   : > { %933 = vmatpush.msra.mxu2 %v603_v20  ;;  %934 = vmatpush.msra.mxu3 %v603_v20  ;;  %v554_v34 = vld [vmem:[%s1689_s9 + $0x60] sm:$0xff]  ;;  %v538_v43 = vmul.f32 %v1742_v32, %v521_v33  ;;  %v522_v55 = vld [vmem:[#allocation2 + $0x70] sm:$0xff]  ;;  %v555_v56 = vld [vmem:[%s1689_s9 + $0x68] sm:$0xff]  ;;  %v568_v0 = vmul.f32 %v1740_v30, %v551_v54 }
 0x135   : > { %610 = vmatpush.msra.mxu0 %v603_v20  ;;  %932 = vmatpush.msra.mxu1 %v603_v20  ;;  %v542_v36 = vld [vmem:[%s1689_s9] sm:$0xff]  ;;  %v571_v44 = vmul.f32 %v1740_v30, %v554_v34  ;;  %v583_v51 = vadd.f32 %v567_v37, %v534_v42  ;;  %v543_v61 = vld [vmem:[%s1689_s9 + $0x8] sm:$0xff]  ;;  %v539_v1 = vmul.f32 %v1742_v32, %v522_v55  ;;  %v519_v9 = vld [vmem:[#allocation2 + $0x10] sm:$0xff] }
 0x136   : > { %936 = vmatpush.msra.mxu2 %v602_v21  ;;  %937 = vmatpush.msra.mxu3 %v602_v21  ;;  %v546_v40 = vld [vmem:[%s1689_s9 + $0x20] sm:$0xff]  ;;  %v559_v45 = vmul.f32 %v1740_v30, %v542_v36  ;;  %v514_v62 = vld [vmem:[#allocation2 + $0x68] sm:$0xff]  ;;  %v572_v2 = vmul.f32 %v1740_v30, %v555_v56  ;;  %v560_v4 = vmul.f32 %v1740_v30, %v543_v61  ;;  %v552_v10 = vld [vmem:[%s1689_s9 + $0x50] sm:$0xff] }
 0x137   : > { %611 = vmatpush.msra.mxu0 %v602_v21  ;;  %935 = vmatpush.msra.mxu1 %v602_v21  ;;  %v563_v49 = vmul.f32 %v1740_v30, %v546_v40  ;;  %v591_v50 = vld [vmem:[#allocation11] sm:$0xff]  ;;  %v587_v52 = vadd.f32 %v571_v44, %v538_v43  ;;  %v547_v63 = vld [vmem:[%s1689_s9 + $0x28] sm:$0xff]  ;;  %v531_v5 = vmul.f32 %v1742_v32, %v514_v62  ;;  %v523_v11 = vld [vmem:[#allocation2 + $0x78] sm:$0xff] }
 0x138   : > { %939 = vmatpush.msra.mxu2 %v601_v22  ;;  %940 = vmatpush.msra.mxu3 %v601_v22  ;;  %v518_v53 = vld [vmem:[#allocation2 + $0x20] sm:$0xff]  ;;  %v575_v57 = vadd.f32 %v559_v45, %v526_v47  ;;  %v564_v6 = vmul.f32 %v1740_v30, %v547_v63  ;;  %v588_v8 = vadd.f32 %v572_v2, %v539_v1  ;;  %v556_v12 = vld [vmem:[%s1689_s9 + $0x70] sm:$0xff]  ;;  %v511_v15 = vld [vmem:[#allocation2 + $0x58] sm:$0xff] }
 0x139   : > { %612 = vmatpush.msra.mxu0 %v601_v22  ;;  %938 = vmatpush.msra.mxu1 %v601_v22  ;;  %v579_v58 = vadd.f32 %v563_v49, %v530_v48  ;;  %v510_v59 = vld [vmem:[#allocation2] sm:$0xff]  ;;  %v535_v60 = vmul.f32 %v1742_v32, %v518_v53  ;;  %v536_v16 = vmul.f32 %v1742_v32, %v519_v9  ;;  %v544_v17 = vld [vmem:[%s1689_s9 + $0x10] sm:$0xff]  ;;  %v515_v18 = vld [vmem:[#allocation2 + $0x8] sm:$0xff] }
 0x13a   : > { %942 = vmatpush.msra.mxu2 %v600_v23  ;;  %943 = vmatpush.msra.mxu3 %v600_v23  ;;  %v527_v3 = vmul.f32 %v1742_v32, %v510_v59  ;;  %v580_v14 = vadd.f32 %v564_v6, %v531_v5  ;;  %v548_v19 = vld [vmem:[%s1689_s9 + $0x30] sm:$0xff]  ;;  %v569_v20 = vmul.f32 %v1740_v30, %v552_v10  ;;  %v520_v29 = vld [vmem:[#allocation2 + $0x38] sm:$0xff]  ;;  %v524_v33 = vld [vmem:[#allocation2 + $0x28] sm:$0xff] }
 0x13b   : > { %613 = vmatpush.msra.mxu0 %v600_v23  ;;  %941 = vmatpush.msra.mxu1 %v600_v23  ;;  %v584_v7 = vadd.f32 %v568_v0, %v535_v60  ;;  %v540_v21 = vmul.f32 %v1742_v32, %v523_v11  ;;  %v573_v22 = vmul.f32 %v1740_v30, %v556_v12  ;;  %v553_v31 = vld [vmem:[%s1689_s9 + $0x58] sm:$0xff]  ;;  %v516_v40 = vld [vmem:[#allocation2 + $0x48] sm:$0xff] }
 0x13c   : > { %945 = vmatpush.msra.mxu2 %v599_v24  ;;  %946 = vmatpush.msra.mxu3 %v599_v24  ;;  %v576_v13 = vadd.f32 %v560_v4, %v527_v3  ;;  %v528_v23 = vmul.f32 %v1742_v32, %v511_v15  ;;  %v557_v34 = vld [vmem:[%s1689_s9 + $0x78] sm:$0xff]  ;;  %v537_v38 = vmul.f32 %v1742_v32, %v520_v29 }
 0x13d   : > { %614 = vmatpush.msra.mxu0 %v599_v24  ;;  %944 = vmatpush.msra.mxu1 %v599_v24  ;;  %v561_v24 = vmul.f32 %v1740_v30, %v544_v17  ;;  %v512_v37 = vld [vmem:[#allocation2 + $0x18] sm:$0xff]  ;;  %v570_v42 = vmul.f32 %v1740_v30, %v553_v31  ;;  %v541_v43 = vmul.f32 %v1742_v32, %v524_v33 }
 0x13e   : > { %948 = vmatpush.msra.mxu2 %v598_v25  ;;  %949 = vmatpush.msra.mxu3 %v598_v25  ;;  %v545_v39 = vld [vmem:[%s1689_s9 + $0x18] sm:$0xff]  ;;  %v574_v44 = vmul.f32 %v1740_v30, %v557_v34  ;;  %v529_v45 = vmul.f32 %v1742_v32, %v512_v37  ;;  %v533_v47 = vmul.f32 %v1742_v32, %v516_v40 }
 0x13f   : > { %615 = vmatpush.msra.mxu0 %v598_v25  ;;  %947 = vmatpush.msra.mxu1 %v598_v25  ;;  %v532_v25 = vmul.f32 %v1742_v32, %v515_v18  ;;  %v586_v49 = vadd.f32 %v570_v42, %v537_v38 }
 0x140   : > { %951 = vmatpush.msra.mxu2 %v597_v26  ;;  %952 = vmatpush.msra.mxu3 %v597_v26 }
 0x141   : > { %616 = vmatpush.msra.mxu0 %v597_v26  ;;  %950 = vmatpush.msra.mxu1 %v597_v26  ;;  %v565_v26 = vmul.f32 %v1740_v30, %v548_v19 }
 0x142   : > { %954 = vmatpush.msra.mxu2 %v596_v27  ;;  %955 = vmatpush.msra.mxu3 %v596_v27 }
 0x143   : > { %617 = vmatpush.msra.mxu0 %v596_v27  ;;  %953 = vmatpush.msra.mxu1 %v596_v27  ;;  %v585_v27 = vadd.f32 %v569_v20, %v536_v16  ;;  %v581_v36 = vadd.f32 %v565_v26, %v532_v25 }
 0x144   : > { %957 = vmatpush.msra.mxu2 %v595_v28  ;;  %958 = vmatpush.msra.mxu3 %v595_v28 }
 0x145   : > { %618 = vmatpush.msra.mxu0 %v595_v28  ;;  %956 = vmatpush.msra.mxu1 %v595_v28  ;;  %v589_v28 = vadd.f32 %v573_v22, %v540_v21 }
 0x146   : > { %960 = vmatpush.msra.mxu2 %v594_v35  ;;  %961 = vmatpush.msra.mxu3 %v594_v35 }
 0x147   : > { %619 = vmatpush.msra.mxu0 %v594_v35  ;;  %959 = vmatpush.msra.mxu1 %v594_v35  ;;  %v577_v35 = vadd.f32 %v561_v24, %v528_v23 }
 0x148   : > { %963 = vmatpush.msra.mxu2 %v593_v41  ;;  %964 = vmatpush.msra.mxu3 %v593_v41 }
 0x149   : > { %620 = vmatpush.msra.mxu0 %v593_v41  ;;  %962 = vmatpush.msra.mxu1 %v593_v41  ;;  %v549_v41 = vld [vmem:[%s1689_s9 + $0x38] sm:$0xff] }
 0x14a   : > { %966 = vmatpush.msra.mxu2 %v592_v46  ;;  %967 = vmatpush.msra.mxu3 %v592_v46  ;;  %v566_v48 = vmul.f32 %v1740_v30, %v549_v41 }
 0x14b   : > { %621 = vmatpush.msra.mxu0 %v592_v46  ;;  %965 = vmatpush.msra.mxu1 %v592_v46  ;;  %v562_v46 = vmul.f32 %v1740_v30, %v545_v39 }
 0x14c   : > { %969 = vmatpush.msra.mxu2 %v591_v50  ;;  %970 = vmatpush.msra.mxu3 %v591_v50 }
 0x14d   : > { %647 = vmatmul.f32.vlgmr.msra.gmra.mxu2 %v583_v51  ;;  %659 = vmatmul.f32.vlgmr.msra.gmra.mxu3 %v587_v52  ;;  %v578_v51 = vadd.f32 %v562_v46, %v529_v45  ;;  %v582_v52 = vadd.f32 %v566_v48, %v533_v47 }
 0x14e   : > { %622 = vmatpush.msra.mxu0 %v591_v50  ;;  %968 = vmatpush.msra.mxu1 %v591_v50  ;;  %v590_v50 = vadd.f32 %v574_v44, %v541_v43 }
 0x14f   : > { %623 = vmatmul.f32.vlgmr.msra.gmra.mxu0 %v575_v57  ;;  %635 = vmatmul.f32.vlgmr.msra.gmra.mxu1 %v579_v58 }
 0x155   : > { %650 = vmatmul.f32.gmra.mxu2 %v584_v7  ;;  %662 = vmatmul.f32.gmra.mxu3 %v588_v8 }
 0x157   : > { %626 = vmatmul.f32.gmra.mxu0 %v576_v13  ;;  %638 = vmatmul.f32.gmra.mxu1 %v580_v14 }
 0x15d   : > { %653 = vmatmul.f32.gmra.mxu2 %v585_v27  ;;  %665 = vmatmul.f32.gmra.mxu3 %v589_v28 }
 0x15f   : > { %629 = vmatmul.f32.gmra.mxu0 %v577_v35  ;;  %641 = vmatmul.f32.gmra.mxu1 %v581_v36 }
 0x165   : > { %656 = vmatmul.f32.gmra.mxu2 %v586_v49  ;;  %668 = vmatmul.f32.gmra.mxu3 %v590_v50 }
 0x167   : > { %632 = vmatmul.f32.gmra.mxu0 %v578_v51  ;;  %644 = vmatmul.f32.gmra.mxu1 %v582_v52 }
 0x1cc   : > { %v624_v53 = vpop.f32.mrf.mxu0  ;;  %v636_v54 = vpop.f32.mrf.mxu1 }
 0x1cd   : > { %672 = vst [vmem:[%s1699_s5] sm:$0xff] %v624_v53 }
 0x1ce   : > { %676 = vst [vmem:[%s1699_s5 + $0x20] sm:$0xff] %v636_v54 }
 0x1d0   : > { %v648_v30 = vpop.f32.mrf.mxu2  ;;  %v660_v32 = vpop.f32.mrf.mxu3 }
 0x1d1   : > { %680 = vst [vmem:[%s1699_s5 + $0x40] sm:$0xff] %v648_v30 }
 0x1d2   : > { %684 = vst [vmem:[%s1699_s5 + $0x60] sm:$0xff] %v660_v32 }
 0x1d4   : > { %v627_v55 = vpop.f32.mrf.mxu0  ;;  %v639_v56 = vpop.f32.mrf.mxu1 }
 0x1d5   : > { %673 = vst [vmem:[%s1699_s5 + $0x8] sm:$0xff] %v627_v55 }
 0x1d6   : > { %677 = vst [vmem:[%s1699_s5 + $0x28] sm:$0xff] %v639_v56 }
 0x1d8   : > { %v651_v57 = vpop.f32.mrf.mxu2  ;;  %v663_v58 = vpop.f32.mrf.mxu3 }
 0x1d9   : > { %681 = vst [vmem:[%s1699_s5 + $0x48] sm:$0xff] %v651_v57 }
 0x1da   : > { %685 = vst [vmem:[%s1699_s5 + $0x68] sm:$0xff] %v663_v58 }
 0x1dc   : > { %v630_v59 = vpop.f32.mrf.mxu0  ;;  %v642_v60 = vpop.f32.mrf.mxu1 }
 0x1dd   : > { %674 = vst [vmem:[%s1699_s5 + $0x10] sm:$0xff] %v630_v59 }
 0x1de   : > { %678 = vst [vmem:[%s1699_s5 + $0x30] sm:$0xff] %v642_v60 }
 0x1e0   : > { %v654_v61 = vpop.f32.mrf.mxu2  ;;  %v666_v62 = vpop.f32.mrf.mxu3 }
 0x1e1   : > { %682 = vst [vmem:[%s1699_s5 + $0x50] sm:$0xff] %v654_v61 }
 0x1e2   : > { %686 = vst [vmem:[%s1699_s5 + $0x70] sm:$0xff] %v666_v62 }
 0x1e4   : > { %v633_v63 = vpop.f32.mrf.mxu0  ;;  %v645_v0 = vpop.f32.mrf.mxu1 }
 0x1e5   : > { %675 = vst [vmem:[%s1699_s5 + $0x18] sm:$0xff] %v633_v63 }
 0x1e6   : > { %679 = vst [vmem:[%s1699_s5 + $0x38] sm:$0xff] %v645_v0 }
 0x1e8   : > { %v657_v1 = vpop.f32.mrf.mxu2  ;;  %v669_v2 = vpop.f32.mrf.mxu3 }
 0x1e9   : > { %683 = vst [vmem:[%s1699_s5 + $0x58] sm:$0xff] %v657_v1 }
 0x1ea   : > { %687 = vst [vmem:[%s1699_s5 + $0x78] sm:$0xff] %v669_v2 }
 0x1eb PF: > { %s1916_s18 = sld [smem:[#allocation20_spill]]  ;;  %s701_s15 = sshll.u32 %s1699_s5, 4  ;;  %s702_s15 = int_to_ptr.vmem [resolvable:$true] %s701_s15 }
 0x1ec   : > { %s1917_s19 = sld [smem:[#allocation29_spill]]  ;;  %s689_s30 = scalar_lea.sflag [#allocation7], %s291_s1 }
 0x1f1   : > { %s874_s0 = sshll.u32 %s1916_s18, 7 }
 0x1f2   : > { %s700_s25 = scalar_lea.hbm %s1917_s19, %s874_s0  ;;  %s1264_s13 = scalar_lea.hbm %s1917_s19, 256 }
 0x1f3   : > { %s703_s14 = sshll.u32 %s700_s25, 4  ;;  %s704_s14 = int_to_ptr.hbm [resolvable:$true] %s703_s14 }
 0x1f4   : > { %s1258_s29 = sshra.s32 %s704_s14, 4  ;;  %s1259_s29 = int_to_ptr.hbm [resolvable:$true] %s1258_s29 }
 0x1f5   : > { %s1260_s11 = scalar_lea.hbm %s1259_s29, 128  ;;  %p1265_p0 = scmp.lt.s32.totalorder %s1259_s29, %s1917_s19 }
 0x1f6   : > { %p1261_p13 = scmp.ne.s32.totalorder %s1259_s29, %s1260_s11  ;;  %p1266_p4 = scmp.lt.s32.totalorder %s1264_s13, %s1260_s11 }
 0x1f8   : > { %p1262_p2 = pnand %p1261_p13, %p1651_p8  ;;  %p1267_p5 = por %p1266_p4, %p1265_p0 }
 0x1fa   : > { %p1263_p3 = pneg %p1262_p2 }
 0x1fc   : > { %p1268_p6 = pnand %p1267_p5, %p1263_p3 }
 0x1fe   : > { %1271 = shalt.err (!%p1268_p6)
}
 0x1ff   : > { %s1409_s1 = smov 128   ;;  %s1410_s5 = smov 8  }
 0x200   : > { %981 = dma.vmem_to_hbm [thread:$0]  (%p1651_p8), %s702_s15, 2048, %s704_s14, %s689_s30, %s1409_s1, %s1409_s1, %s1410_s5  }
 0x201 PF: > { %p1004_p11 = scmp.ge.s32.totalorder %s1402_s7, 2  ;;  %s718_s8 = sand.u32 1, %s1350_s20  }
 0x202   : > { %s719_s18 = scalar_lea.sflag [#allocation7], %s718_s8 }
 0x203   : > { %p998_p10 = pnand %p1004_p11, %p1655_p7 }
 0x205   : > { %p999_p1 = pneg %p998_p10 }
 0x207   : > { %1345 = dma.done.wait (%p999_p1), %s719_s18, 2048  }
 0x208   : > { %1347 = vsyncadd (%p999_p1), %s719_s18, 4294965248  ;;  %s26_s7 = sadd.s32 1, %s1402_s7   ;;  %s1919_s2 = sld [smem:[#allocation19_spill]] }
 0x209   : > { %p1829_p9 = scmp.ge.s32.totalorder %s26_s7, 6   ;;  %s1920_s25 = sld [smem:[#allocation24_spill]] }
 0x20a   : > { %s1921_s4 = sld [smem:[#allocation25_spill]]  ;;  %s1926_s20 = smov %s1354_s21 }
 0x20b   : > { %s1922_s28 = sld [smem:[#allocation21_spill]]  ;;  %s1927_s21 = smov %s1358_s22 }
 0x20c   : > { %s1923_s30 = sld [smem:[#allocation22_spill]]  ;;  %s1928_s22 = smov %s1634_s16 }
 0x20d   : > { %s1924_s12 = sld [smem:[#allocation23_spill]]  ;;  %s1929_s23 = smov %s1366_s24 }
 0x20e   : > { %s1930_s24 = smov %s1919_s2  ;;  %s1931_s0 = smov %s1378_s26 }
 0x20f   : > { %s1932_s26 = smov %s1382_s27  ;;  %s1934_s29 = smov %s1398_s6 }
 0x210   : > { %s1933_s27 = smov %s1921_s4  ;;  %25 = sbr.rel (!%p1829_p9) target bundleno = 19 (0x13), region = 117 }
 0x213   : > { %s1935_s6 = smov %s1924_s12 }
 0x215   :  { %725 = vsyncpa [#allocation6], 1 }
 0x216   :  { %727 = vsyncpa [#allocation6 + $0x1], 1 }
 0x217   :  { %728 = vsyncpa [#allocation9], 1 }
 0x218   :  { %730 = vsyncpa [#allocation9 + $0x1], 1 }
 0x219   :  { %731 = vsyncpa [#allocation12], 1 }
 0x21a   :  { %732 = vsyncpa [#allocation7], 1 }
 0x21b   :  { %734 = vsyncpa [#allocation7 + $0x1], 1 }

</bundles_post_ra>
